<compile_context>
chip_gen: v5e
topology: v5e:2x2
jax: 0.10.0
libtpu: 0.0.40
codegen_flags: <defaults>
</compile_context>

<pallas_src>
import jax
import jax.numpy as jnp
from jax.experimental import pallas as pl
from jax.experimental.pallas import tpu as pltpu


def _pos_embed_kernel(tbl_ref, expand_ref, out_ref):
    # tbl_ref   : (2F, W+H)  rows <F hold row_embed.T (cols [0,W)), rows >=F hold col_embed.T (cols [W,W+H))
    # expand_ref: (W+H, H*W) one-hot expansion: [x, y*W+x] = 1 and [W+y, y*W+x] = 1
    # out_ref   : (B, 2F, H*W)
    slab = jnp.dot(tbl_ref[...], expand_ref[...],
                   preferred_element_type=jnp.float32)          # (2F, H*W), lane-dense
    out_ref[...] = jnp.broadcast_to(slab[None], out_ref.shape)  # replicate over B, full-width stores


def position_embedding_learned(x, row_embed_weight, col_embed_weight):
    """Forward pass of PositionEmbeddingLearned.

    x                : (B, C, H, W)  -- only the shape is used (as in the PyTorch module)
    row_embed_weight : (w_table, F)
    col_embed_weight : (h_table, F)
    returns          : (B, 2F, H, W) float32
    """
    B = x.shape[0]
    H, W = x.shape[-2], x.shape[-1]
    F = row_embed_weight.shape[1]
    HW = H * W

    # --- tiny glue (index metadata + table packing), zero-cost vs. the output writeback ---
    row_t = row_embed_weight[:W, :].T.astype(jnp.float32)   # (F, W)   assumes W <= w_table
    col_t = col_embed_weight[:H, :].T.astype(jnp.float32)   # (F, H)   assumes H <= h_table

    # Single packed table so one DMA feeds the kernel.
    tbl = jnp.zeros((2 * F, W + H), jnp.float32)
    tbl = tbl.at[:F, :W].set(row_t)
    tbl = tbl.at[F:, W:].set(col_t)

    # One-hot expansion matrix (W+H, H*W): selects row_t[:, x] for channels <F and
    # col_t[:, y] for channels >=F at flattened position l = y*W + x.
    l = jnp.arange(HW)
    x_idx = l % W
    y_idx = l // W
    k = jnp.arange(W + H)[:, None]
    expand = (((k < W) & (k == x_idx[None, :])) |
              ((k >= W) & ((k - W) == y_idx[None, :]))).astype(jnp.float32)   # (W+H, HW)

    out_flat = pl.pallas_call(
        _pos_embed_kernel,
        out_shape=jax.ShapeDtypeStruct((B, 2 * F, HW), jnp.float32),
        grid_spec=pltpu.PrefetchScalarGridSpec(
            num_scalar_prefetch=0,
            grid=(1,),  # single step: slab computed once, whole output written as one block
            in_specs=[
                pl.BlockSpec((2 * F, W + H), lambda i: (0, 0)),
                pl.BlockSpec((W + H, HW), lambda i: (0, 0)),
            ],
            out_specs=pl.BlockSpec((B, 2 * F, HW), lambda i: (0, 0, 0)),
        ),
        compiler_params=pltpu.CompilerParams(
            dimension_semantics=("arbitrary",),
        ),
    )(tbl, expand)

    # Pure (contiguous, row-major) reshape back to NCHW — free.
    return out_flat.reshape(B, 2 * F, H, W)


def _reference(x, row_w, col_w):
    """Pure-JAX reference mirroring the PyTorch forward exactly."""
    B = x.shape[0]
    H, W = x.shape[-2], x.shape[-1]
    x_emb = row_w[jnp.arange(W)]                       # (W, F)
    y_emb = col_w[jnp.arange(H)]                       # (H, F)
    pos = jnp.concatenate(
        [
            jnp.broadcast_to(x_emb[None, :, :], (H, W, x_emb.shape[-1])),
            jnp.broadcast_to(y_emb[:, None, :], (H, W, y_emb.shape[-1])),
        ],
        axis=-1,
    )                                                  # (H, W, 2F)
    pos = jnp.transpose(pos, (2, 0, 1))[None]          # (1, 2F, H, W)
    return jnp.broadcast_to(pos, (B,) + pos.shape[1:]).astype(jnp.float32)


if __name__ == "__main__":
    # Module config (small synthetic sizes): tables h=50, w=50; num_pos_feats=32.
    H_TABLE, W_TABLE, NUM_POS_FEATS = 50, 50, 32

    key = jax.random.PRNGKey(0)
    k_row, k_col, k_x = jax.random.split(key, 3)

    # nn.init.uniform_ -> U[0, 1)
    row_embed_weight = jax.random.uniform(k_row, (W_TABLE, NUM_POS_FEATS), dtype=jnp.float32)
    col_embed_weight = jax.random.uniform(k_col, (H_TABLE, NUM_POS_FEATS), dtype=jnp.float32)

    # Example input feature map (NCHW); only its shape matters for the forward.
    x = jax.random.normal(k_x, (2, 4, 16, 16), dtype=jnp.float32)

    pos = position_embedding_learned(x, row_embed_weight, col_embed_weight)
    pos = jax.block_until_ready(pos)

    ref = _reference(x, row_embed_weight, col_embed_weight)
    assert pos.shape == (2, 2 * NUM_POS_FEATS, 16, 16), pos.shape
    assert jnp.allclose(pos, ref), "Pallas output mismatch vs reference"

    print("KERNEL_OK")
</pallas_src>

<mosaic_0001>
module attributes {stable_mosaic.version = 11 : i64} {
  func.func @_pos_embed_kernel(%arg0: i32, %arg1: memref<64x32xf32, #tpu.memory_space<vmem>>, %arg2: memref<32x256xf32, #tpu.memory_space<vmem>>, %arg3: memref<2x64x256xf32, #tpu.memory_space<vmem>>) attributes {dimension_semantics = [#tpu.dimension_semantics<arbitrary>], iteration_bounds = array<i64: 1>, scalar_prefetch = 0 : i64, scratch_operands = 0 : i64, tpu.core_type = #tpu.core_type<tc>, window_params = [{pipeline_mode = #tpu.pipeline_mode<synchronous>, transform_indices = @transform_0, window_bounds = array<i64: 64, 32>}, {pipeline_mode = #tpu.pipeline_mode<synchronous>, transform_indices = @transform_1, window_bounds = array<i64: 32, 256>}, {pipeline_mode = #tpu.pipeline_mode<synchronous>, transform_indices = @transform_2, window_bounds = array<i64: 2, 64, 256>}]} {
    %c0 = arith.constant 0 : index
    %c0_0 = arith.constant 0 : index
    %0 = vector.load %arg1[%c0, %c0_0] : memref<64x32xf32, #tpu.memory_space<vmem>>, vector<64x32xf32>
    %c0_1 = arith.constant 0 : index
    %c0_2 = arith.constant 0 : index
    %1 = vector.load %arg2[%c0_1, %c0_2] : memref<32x256xf32, #tpu.memory_space<vmem>>, vector<32x256xf32>
    %cst = arith.constant dense<0.000000e+00> : vector<64x256xf32>
    %2 = tpu.matmul %0, %1, %cst {dimension_numbers = #tpu.dot_dimension_numbers<[1], [0], [0], [1], [0, 0, 1, 1], [], []>} : vector<64x32xf32>, vector<32x256xf32>, vector<64x256xf32> -> vector<64x256xf32>
    %3 = vector.shape_cast %2 : vector<64x256xf32> to vector<1x64x256xf32>
    %4 = vector.shape_cast %3 : vector<1x64x256xf32> to vector<1x64x256xf32>
    %5 = vector.broadcast %4 : vector<1x64x256xf32> to vector<2x64x256xf32>
    %c0_3 = arith.constant 0 : index
    %c0_4 = arith.constant 0 : index
    %c0_5 = arith.constant 0 : index
    %6 = vector.load %arg3[%c0_3, %c0_4, %c0_5] : memref<2x64x256xf32, #tpu.memory_space<vmem>>, vector<2x64x256xf32>
    tpu.vector_store %arg3[%c0_3, %c0_4, %c0_5], %5 {strides = array<i32>} : memref<2x64x256xf32, #tpu.memory_space<vmem>>, vector<2x64x256xf32>,
    return
  }
  func.func @transform_0(%arg0: i32) -> (i32, i32) {
    %c0_i32 = arith.constant 0 : i32
    %c0_i32_0 = arith.constant 0 : i32
    %c0_i32_1 = arith.constant 0 : i32
    return %c0_i32, %c0_i32_0 : i32, i32
  }
  func.func @transform_1(%arg0: i32) -> (i32, i32) {
    %c0_i32 = arith.constant 0 : i32
    %c0_i32_0 = arith.constant 0 : i32
    %c0_i32_1 = arith.constant 0 : i32
    return %c0_i32, %c0_i32_0 : i32, i32
  }
  func.func @transform_2(%arg0: i32) -> (i32, i32, i32) {
    %c0_i32 = arith.constant 0 : i32
    %c0_i32_0 = arith.constant 0 : i32
    %c0_i32_1 = arith.constant 0 : i32
    %c0_i32_2 = arith.constant 0 : i32
    return %c0_i32, %c0_i32_0, %c0_i32_1 : i32, i32, i32
  }
}

</mosaic_0001>

<bundles_post_ra>
// kernel: tpu_custom_call.1
= control target key start
LH: loop header
LB: loop body
LE: loop exit
PB: predicated region body
PF: predicated region fallthrough
CT: control target
= control target key end

     0   :  { %vm28_vm0 = vcmask 261120   ;;  %s323_s0 = inlined_call_operand.vmem [shape: f32[64,32], index: 0, kind: input, shape index: {}]   ;;  %s324_s1 = inlined_call_operand.vmem [shape: f32[32,256], index: 1, kind: input, shape index: {}]   ;;  %s325_s2 = inlined_call_operand.hbm [shape: f32[2,64,256], index: 2, kind: output, shape index: {}]  }
   0x1   :  { %v26_v0 = vld [vmem:[%s324_s1 + $0x30] sm:$0xff]  ;;  %v27_v1 = vld [vmem:[%s324_s1 + $0x38] sm:$0xff]  ;;  %v24_v2 = vld [vmem:[%s324_s1 + $0x20] sm:$0xff] }
   0x2   :  { %201 = vmatpush.msra.mxu2 %v26_v0  ;;  %205 = vmatpush.msra.mxu3 %v27_v1  ;;  %v25_v3 = vld [vmem:[%s324_s1 + $0x28] sm:$0xff]  ;;  %v22_v4 = vld [vmem:[%s324_s1 + $0x10] sm:$0xff]  ;;  %v23_v5 = vld [vmem:[%s324_s1 + $0x18] sm:$0xff] }
   0x3   :  { %65 = vmatpush.msra.mxu0 %v26_v0  ;;  %106 = vmatpush.msra.mxu1 %v27_v1  ;;  %v20_v6 = vld [vmem:[%s324_s1] sm:$0xff]  ;;  %v21_v7 = vld [vmem:[%s324_s1 + $0x8] sm:$0xff] }
   0x4   :  { %202 = vmatpush.msra.mxu2 %v24_v2  ;;  %206 = vmatpush.msra.mxu3 %v25_v3  ;;  %v16_v8 = vld [vmem:[%s323_s0 + $0x20] sm:$0xff] }
   0x5   :  { %66 = vmatpush.msra.mxu0 %v24_v2  ;;  %107 = vmatpush.msra.mxu1 %v25_v3 }
   0x6   :  { %203 = vmatpush.msra.mxu2 %v22_v4  ;;  %207 = vmatpush.msra.mxu3 %v23_v5 }
   0x7   :  { %7 = vsyncpa [#allocation3], 0  ;;  %67 = vmatpush.msra.mxu0 %v22_v4  ;;  %108 = vmatpush.msra.mxu1 %v23_v5  ;;  %v12_v9 = vld [vmem:[%s323_s0] sm:$0xff]  ;;  %v17_v10 = vld [vmem:[%s323_s0 + $0x28] sm:$0xff]  ;;  %s173_s15 = sshll.u32 %s325_s2, 4  ;;  %s239_s16 = smov 256   ;;  %s174_s15 = int_to_ptr.hbm [resolvable:$true] %s173_s15 }
   0x8   :  { %204 = vmatpush.msra.mxu2 %v20_v6  ;;  %208 = vmatpush.msra.mxu3 %v21_v7  ;;  %v13_v11 = vld [vmem:[%s323_s0 + $0x8] sm:$0xff]  ;;  %v18_v12 = vld [vmem:[%s323_s0 + $0x30] sm:$0xff]  ;;  %v19_v14 = vld [vmem:[%s323_s0 + $0x38] sm:$0xff]  ;;  %s240_s17 = smov 16  }
   0x9   :  { %189 = vmatmul.msk.f32.vlgmr.msra.gmra.mxu2 %vm28_vm0, %v16_v8  ;;  %197 = vmatmul.msk.f32.vlgmr.msra.gmra.mxu3 %vm28_vm0, %v16_v8  ;;  %v14_v13 = vld [vmem:[%s323_s0 + $0x10] sm:$0xff]  ;;  %v15_v15 = vld [vmem:[%s323_s0 + $0x18] sm:$0xff]  ;;  %s238_s0 = smov [#allocation2]  }
   0xa   :  { %68 = vmatpush.msra.mxu0 %v20_v6  ;;  %109 = vmatpush.msra.mxu1 %v21_v7  ;;  %s171_s12 = sshll.u32 %s238_s0, 4  ;;  %s172_s12 = int_to_ptr.vmem [resolvable:$true] %s171_s12 }
   0xb   :  { %185 = vmatmul.msk.f32.vlgmr.msra.gmra.mxu0 %vm28_vm0, %v12_v9  ;;  %193 = vmatmul.msk.f32.vlgmr.msra.gmra.mxu1 %vm28_vm0, %v12_v9 }
  0x11   :  { %190 = vmatmul.msk.f32.gmra.mxu2 %vm28_vm0, %v17_v10  ;;  %198 = vmatmul.msk.f32.gmra.mxu3 %vm28_vm0, %v17_v10 }
  0x13   :  { %186 = vmatmul.msk.f32.gmra.mxu0 %vm28_vm0, %v13_v11  ;;  %194 = vmatmul.msk.f32.gmra.mxu1 %vm28_vm0, %v13_v11 }
  0x19   :  { %191 = vmatmul.msk.f32.gmra.mxu2 %vm28_vm0, %v18_v12  ;;  %199 = vmatmul.msk.f32.gmra.mxu3 %vm28_vm0, %v18_v12 }
  0x1b   :  { %187 = vmatmul.msk.f32.gmra.mxu0 %vm28_vm0, %v14_v13  ;;  %195 = vmatmul.msk.f32.gmra.mxu1 %vm28_vm0, %v14_v13 }
  0x21   :  { %192 = vmatmul.msk.f32.gmra.mxu2 %vm28_vm0, %v19_v14  ;;  %200 = vmatmul.msk.f32.gmra.mxu3 %vm28_vm0, %v19_v14 }
  0x23   :  { %188 = vmatmul.msk.f32.gmra.mxu0 %vm28_vm0, %v15_v15  ;;  %196 = vmatmul.msk.f32.gmra.mxu1 %vm28_vm0, %v15_v15 }
  0x88   :  { %v70_v16 = vpop.f32.mrf.mxu0  ;;  %v111_v17 = vpop.f32.mrf.mxu1 }
  0x89   :  { %135 = vst [vmem:[#allocation2] sm:$0xff] %v70_v16 }
  0x8a   :  { %151 = vst [vmem:[#allocation2 + $0x80] sm:$0xff] %v70_v16 }
  0x8b   :  { %136 = vst [vmem:[#allocation2 + $0x8] sm:$0xff] %v111_v17 }
  0x8c   :  { %v82_v18 = vpop.f32.mrf.mxu2  ;;  %152 = vst [vmem:[#allocation2 + $0x88] sm:$0xff] %v111_v17  ;;  %v123_v19 = vpop.f32.mrf.mxu3 }
  0x8d   :  { %143 = vst [vmem:[#allocation2 + $0x40] sm:$0xff] %v82_v18 }
  0x8e   :  { %159 = vst [vmem:[#allocation2 + $0xc0] sm:$0xff] %v82_v18 }
  0x8f   :  { %144 = vst [vmem:[#allocation2 + $0x48] sm:$0xff] %v123_v19 }
  0x90   :  { %160 = vst [vmem:[#allocation2 + $0xc8] sm:$0xff] %v123_v19  ;;  %v73_v20 = vpop.f32.mrf.mxu0  ;;  %v114_v21 = vpop.f32.mrf.mxu1 }
  0x91   :  { %137 = vst [vmem:[#allocation2 + $0x10] sm:$0xff] %v73_v20 }
  0x92   :  { %153 = vst [vmem:[#allocation2 + $0x90] sm:$0xff] %v73_v20 }
  0x93   :  { %138 = vst [vmem:[#allocation2 + $0x18] sm:$0xff] %v114_v21 }
  0x94   :  { %v85_v22 = vpop.f32.mrf.mxu2  ;;  %154 = vst [vmem:[#allocation2 + $0x98] sm:$0xff] %v114_v21  ;;  %v126_v23 = vpop.f32.mrf.mxu3 }
  0x95   :  { %145 = vst [vmem:[#allocation2 + $0x50] sm:$0xff] %v85_v22 }
  0x96   :  { %161 = vst [vmem:[#allocation2 + $0xd0] sm:$0xff] %v85_v22 }
  0x97   :  { %146 = vst [vmem:[#allocation2 + $0x58] sm:$0xff] %v126_v23 }
  0x98   :  { %162 = vst [vmem:[#allocation2 + $0xd8] sm:$0xff] %v126_v23  ;;  %v76_v24 = vpop.f32.mrf.mxu0  ;;  %v117_v25 = vpop.f32.mrf.mxu1 }
  0x99   :  { %139 = vst [vmem:[#allocation2 + $0x20] sm:$0xff] %v76_v24 }
  0x9a   :  { %155 = vst [vmem:[#allocation2 + $0xa0] sm:$0xff] %v76_v24 }
  0x9b   :  { %140 = vst [vmem:[#allocation2 + $0x28] sm:$0xff] %v117_v25 }
  0x9c   :  { %v88_v26 = vpop.f32.mrf.mxu2  ;;  %156 = vst [vmem:[#allocation2 + $0xa8] sm:$0xff] %v117_v25  ;;  %v129_v27 = vpop.f32.mrf.mxu3 }
  0x9d   :  { %147 = vst [vmem:[#allocation2 + $0x60] sm:$0xff] %v88_v26 }
  0x9e   :  { %163 = vst [vmem:[#allocation2 + $0xe0] sm:$0xff] %v88_v26 }
  0x9f   :  { %148 = vst [vmem:[#allocation2 + $0x68] sm:$0xff] %v129_v27 }
  0xa0   :  { %164 = vst [vmem:[#allocation2 + $0xe8] sm:$0xff] %v129_v27  ;;  %v79_v28 = vpop.f32.mrf.mxu0  ;;  %v120_v29 = vpop.f32.mrf.mxu1 }
  0xa1   :  { %141 = vst [vmem:[#allocation2 + $0x30] sm:$0xff] %v79_v28 }
  0xa2   :  { %157 = vst [vmem:[#allocation2 + $0xb0] sm:$0xff] %v79_v28 }
  0xa3   :  { %142 = vst [vmem:[#allocation2 + $0x38] sm:$0xff] %v120_v29 }
  0xa4   :  { %v91_v30 = vpop.f32.mrf.mxu2  ;;  %158 = vst [vmem:[#allocation2 + $0xb8] sm:$0xff] %v120_v29  ;;  %v132_v31 = vpop.f32.mrf.mxu3 }
  0xa5   :  { %149 = vst [vmem:[#allocation2 + $0x70] sm:$0xff] %v91_v30 }
  0xa6   :  { %165 = vst [vmem:[#allocation2 + $0xf0] sm:$0xff] %v91_v30 }
  0xa7   :  { %150 = vst [vmem:[#allocation2 + $0x78] sm:$0xff] %v132_v31 }
  0xa8   :  { %166 = vst [vmem:[#allocation2 + $0xf8] sm:$0xff] %v132_v31 }
  0xa9   :  { %179 = dma.vmem_to_hbm [thread:$0]  %s172_s12, 4096, %s174_s15, [#allocation3], %s239_s16, %s239_s16, %s240_s17  }
  0xaa   :  { %236 = dma.done.wait [#allocation3], 4096  }
  0xab   :  { %237 = vsyncadd [#allocation3], 4294963200 }
  0xac   :  { %184 = vsyncpa [#allocation3], 1 }

</bundles_post_ra>
